<compile_context>
chip_gen: v6e
topology: v6e:2x2x1
jax: 0.10.0
libtpu: 0.0.40
codegen_flags: <defaults>
</compile_context>

<pallas_src>
import jax
import jax.numpy as jnp
import numpy as np
from jax.experimental import pallas as pl
from jax.experimental.pallas import tpu as pltpu


_VMEM_LIMIT_BYTES = 32 * 1024 * 1024  # safe scoped limit on v5e / v6e / v7x


def _pick_tile(dim, base, max_tile):
    """Largest multiple of `base` that divides `dim` and is <= max_tile.

    Falls back to the full dimension when `dim` is not a multiple of `base`
    (allowed by the (8,128) rule when the block equals the full array dim).
    """
    if dim % base != 0:
        return dim
    best = base
    t = base
    while t <= min(max_tile, dim):
        if dim % t == 0:
            best = t
        t += base
    return best


# ----------------------------------------------------------------------------
# Kernel 1: per-row sum / sum-of-squares (init path only).
#   x_ref:     (TR, TM) f32 tile of the (R, M) = (N*C, H*W) view of x
#   sum_ref:   (TR, 1)  f32 accumulator (resident across the M grid axis)
#   sumsq_ref: (TR, 1)  f32 accumulator
# ----------------------------------------------------------------------------
def _stats_kernel(x_ref, sum_ref, sumsq_ref):
    @pl.when(pl.program_id(1) == 0)
    def _():
        sum_ref[...] = jnp.zeros_like(sum_ref)
        sumsq_ref[...] = jnp.zeros_like(sumsq_ref)

    x = x_ref[...].astype(jnp.float32)
    sum_ref[...] += jnp.sum(x, axis=1, keepdims=True)
    sumsq_ref[...] += jnp.sum(x * x, axis=1, keepdims=True)


def actnorm_stats(x2):
    """Per-row sum and sum-of-squares over the last axis. x2: (R, M) f32."""
    R, M = x2.shape
    tr = _pick_tile(R, 8, 128)
    tm = _pick_tile(M, 128, 2048)
    grid = (R // tr, M // tm)

    return pl.pallas_call(
        _stats_kernel,
        out_shape=(
            jax.ShapeDtypeStruct((R, 1), jnp.float32),
            jax.ShapeDtypeStruct((R, 1), jnp.float32),
        ),
        grid=grid,
        in_specs=[pl.BlockSpec((tr, tm), lambda i, j: (i, j))],
        out_specs=(
            pl.BlockSpec((tr, 1), lambda i, j: (i, 0)),
            pl.BlockSpec((tr, 1), lambda i, j: (i, 0)),
        ),
        compiler_params=pltpu.CompilerParams(
            dimension_semantics=("parallel", "arbitrary"),
            vmem_limit_bytes=_VMEM_LIMIT_BYTES,
        ),
    )(x2)


# ----------------------------------------------------------------------------
# Kernel 2: steady-state affine transform  out = scale * (x + loc).
#   x_ref:     (TR, TM)   tile of (N*C, H*W)
#   loc_ref:   (TR, 1)    per-row loc   (channel params tiled over batch)
#   scale_ref: (TR, 1)    per-row scale
# ----------------------------------------------------------------------------
def _affine_kernel(x_ref, loc_ref, scale_ref, out_ref):
    x = x_ref[...].astype(jnp.float32)
    out_ref[...] = (scale_ref[...] * (x + loc_ref[...])).astype(out_ref.dtype)


def actnorm_affine(x2, loc_rows, scale_rows):
    """x2: (R, M); loc_rows/scale_rows: (R, 1)."""
    R, M = x2.shape
    tr = _pick_tile(R, 8, 128)
    tm = _pick_tile(M, 128, 2048)
    grid = (R // tr, M // tm)

    return pl.pallas_call(
        _affine_kernel,
        out_shape=jax.ShapeDtypeStruct((R, M), x2.dtype),
        grid=grid,
        in_specs=[
            pl.BlockSpec((tr, tm), lambda i, j: (i, j)),
            pl.BlockSpec((tr, 1), lambda i, j: (i, 0)),
            pl.BlockSpec((tr, 1), lambda i, j: (i, 0)),
        ],
        out_specs=pl.BlockSpec((tr, tm), lambda i, j: (i, j)),
        compiler_params=pltpu.CompilerParams(
            dimension_semantics=("parallel", "parallel"),
            vmem_limit_bytes=_VMEM_LIMIT_BYTES,
        ),
    )(x2, loc_rows, scale_rows)


# ----------------------------------------------------------------------------
# Stateful wrapper mirroring the PyTorch module semantics.
# ----------------------------------------------------------------------------
class ActNorm:
    def __init__(self, in_channel, logdet=True):
        self.in_channel = in_channel
        self.loc = jnp.zeros((1, in_channel, 1, 1), jnp.float32)
        self.scale = jnp.ones((1, in_channel, 1, 1), jnp.float32)
        self.initialized = 0  # Python int -> trace-time specialization
        self.logdet = logdet

    def _initialize(self, x):
        N, C, H, W = x.shape
        m = N * H * W
        x2 = x.reshape(N * C, H * W)                    # free reshape, native layout
        row_sum, row_sumsq = actnorm_stats(x2)          # heavy pass over x in Pallas
        # Tiny (N*C,)-sized finish: fold batch rows into channels.
        ch_sum = row_sum.reshape(N, C).sum(axis=0)      # (C,)
        ch_sumsq = row_sumsq.reshape(N, C).sum(axis=0)  # (C,)
        mean = ch_sum / m
        # Unbiased (ddof=1) variance, matching torch.std default.
        var = (ch_sumsq - ch_sum * ch_sum / m) / (m - 1)
        std = jnp.sqrt(var)
        self.loc = (-mean).reshape(1, C, 1, 1)
        self.scale = (1.0 / (std + 1e-6)).reshape(1, C, 1, 1)

    def forward(self, x):
        N, C, H, W = x.shape
        if self.initialized == 0:
            self._initialize(x)
            self.initialized = 1

        loc_c = self.loc.reshape(C)
        scale_c = self.scale.reshape(C)
        # Per-row (n, c) params so the kernel reads x in its native (N*C, H*W) layout.
        loc_rows = jnp.tile(loc_c, N).reshape(N * C, 1)
        scale_rows = jnp.tile(scale_c, N).reshape(N * C, 1)

        out2 = actnorm_affine(x.reshape(N * C, H * W), loc_rows, scale_rows)
        out = out2.reshape(N, C, H, W)

        if self.logdet:
            # logdet depends only on the (C,) scale -- negligible next to the affine pass.
            ld = jnp.float32(H * W) * jnp.sum(jnp.log(jnp.abs(scale_c)))
            return out, ld
        return out

    def reverse(self, output):
        # TODO(synk): reverse path kept as plain broadcast elementwise JAX.
        return output / self.scale - self.loc


def _reference_forward(x):
    """Pure-JAX reference of the PyTorch first-call forward."""
    C = x.shape[1]
    flatten = jnp.transpose(x, (1, 0, 2, 3)).reshape(C, -1)
    mean = jnp.mean(flatten, axis=1)
    std = jnp.std(flatten, axis=1, ddof=1)  # torch.std default: unbiased
    loc = (-mean).reshape(1, C, 1, 1)
    scale = (1.0 / (std + 1e-6)).reshape(1, C, 1, 1)
    out = scale * (x + loc)
    ld = x.shape[2] * x.shape[3] * jnp.sum(jnp.log(jnp.abs(scale)))
    return out, ld


if __name__ == "__main__":
    key = jax.random.PRNGKey(0)
    x = jax.random.normal(key, (2, 4, 16, 16), dtype=jnp.float32) * 1.7 + 0.3

    layer = ActNorm(in_channel=4, logdet=True)

    # First call: data-dependent init (stats kernel) + affine kernel.
    out, logdet = layer.forward(x)
    out, logdet = jax.block_until_ready((out, logdet))

    out_ref, logdet_ref = _reference_forward(x)
    np.testing.assert_allclose(np.asarray(out), np.asarray(out_ref), rtol=2e-5, atol=2e-5)
    np.testing.assert_allclose(np.asarray(logdet), np.asarray(logdet_ref), rtol=2e-5, atol=2e-5)

    # Second call: steady-state path (pure elementwise kernel, params fixed).
    out2, logdet2 = layer.forward(x)
    out2, logdet2 = jax.block_until_ready((out2, logdet2))
    np.testing.assert_allclose(np.asarray(out2), np.asarray(out), rtol=1e-6, atol=1e-6)

    print("KERNEL_OK")
</pallas_src>

<mosaic_0001>
module attributes {stable_mosaic.version = 11 : i64} {
  func.func @_stats_kernel(%arg0: i32, %arg1: i32, %arg2: memref<8x256xf32, #tpu.memory_space<vmem>>, %arg3: memref<8x1xf32, #tpu.memory_space<vmem>>, %arg4: memref<8x1xf32, #tpu.memory_space<vmem>>) attributes {dimension_semantics = [#tpu.dimension_semantics<parallel>, #tpu.dimension_semantics<arbitrary>], iteration_bounds = array<i64: 1, 1>, scalar_prefetch = 0 : i64, scratch_operands = 0 : i64, tpu.core_type = #tpu.core_type<tc>, window_params = [{transform_indices = @transform_0, window_bounds = array<i64: 8, 256>}, {transform_indices = @transform_1, window_bounds = array<i64: 8, 1>}, {transform_indices = @transform_2, window_bounds = array<i64: 8, 1>}]} {
    %c0_i32 = arith.constant 0 : i32
    %0 = arith.cmpi eq, %arg1, %c0_i32 : i32
    %1 = arith.extui %0 : i1 to i32
    %c0_i32_0 = arith.constant 0 : i32
    %2 = arith.cmpi ne, %1, %c0_i32_0 : i32
    scf.if %2 {
      %cst_11 = arith.constant 0.000000e+00 : f32
      %15 = vector.broadcast %cst_11 : f32 to vector<8x1xf32>
      %c0_12 = arith.constant 0 : index
      %c0_13 = arith.constant 0 : index
      %16 = vector.load %arg3[%c0_12, %c0_13] : memref<8x1xf32, #tpu.memory_space<vmem>>, vector<8x1xf32>
      tpu.vector_store %arg3[%c0_12, %c0_13], %15 {strides = array<i32>} : memref<8x1xf32, #tpu.memory_space<vmem>>, vector<8x1xf32>,
      %cst_14 = arith.constant 0.000000e+00 : f32
      %17 = vector.broadcast %cst_14 : f32 to vector<8x1xf32>
      %c0_15 = arith.constant 0 : index
      %c0_16 = arith.constant 0 : index
      %18 = vector.load %arg4[%c0_15, %c0_16] : memref<8x1xf32, #tpu.memory_space<vmem>>, vector<8x1xf32>
      tpu.vector_store %arg4[%c0_15, %c0_16], %17 {strides = array<i32>} : memref<8x1xf32, #tpu.memory_space<vmem>>, vector<8x1xf32>,
    } else {
    }
    %c0 = arith.constant 0 : index
    %c0_1 = arith.constant 0 : index
    %3 = vector.load %arg2[%c0, %c0_1] : memref<8x256xf32, #tpu.memory_space<vmem>>, vector<8x256xf32>
    %c0_2 = arith.constant 0 : index
    %c0_3 = arith.constant 0 : index
    %4 = vector.load %arg3[%c0_2, %c0_3] : memref<8x1xf32, #tpu.memory_space<vmem>>, vector<8x1xf32>
    %cst = arith.constant dense<0.000000e+00> : vector<8xf32>
    %5 = vector.multi_reduction <add>, %3, %cst [1] : vector<8x256xf32> to vector<8xf32>
    %6 = vector.shape_cast %5 : vector<8xf32> to vector<8x1xf32>
    %7 = arith.addf %4, %6 : vector<8x1xf32>
    %c0_4 = arith.constant 0 : index
    %c0_5 = arith.constant 0 : index
    %8 = vector.load %arg3[%c0_4, %c0_5] : memref<8x1xf32, #tpu.memory_space<vmem>>, vector<8x1xf32>
    tpu.vector_store %arg3[%c0_4, %c0_5], %7 {strides = array<i32>} : memref<8x1xf32, #tpu.memory_space<vmem>>, vector<8x1xf32>,
    %c0_6 = arith.constant 0 : index
    %c0_7 = arith.constant 0 : index
    %9 = vector.load %arg4[%c0_6, %c0_7] : memref<8x1xf32, #tpu.memory_space<vmem>>, vector<8x1xf32>
    %10 = arith.mulf %3, %3 : vector<8x256xf32>
    %cst_8 = arith.constant dense<0.000000e+00> : vector<8xf32>
    %11 = vector.multi_reduction <add>, %10, %cst_8 [1] : vector<8x256xf32> to vector<8xf32>
    %12 = vector.shape_cast %11 : vector<8xf32> to vector<8x1xf32>
    %13 = arith.addf %9, %12 : vector<8x1xf32>
    %c0_9 = arith.constant 0 : index
    %c0_10 = arith.constant 0 : index
    %14 = vector.load %arg4[%c0_9, %c0_10] : memref<8x1xf32, #tpu.memory_space<vmem>>, vector<8x1xf32>
    tpu.vector_store %arg4[%c0_9, %c0_10], %13 {strides = array<i32>} : memref<8x1xf32, #tpu.memory_space<vmem>>, vector<8x1xf32>,
    return
  }
  func.func @transform_0(%arg0: i32, %arg1: i32) -> (i32, i32) {
    %c0_i32 = arith.constant 0 : i32
    return %arg0, %arg1 : i32, i32
  }
  func.func @transform_1(%arg0: i32, %arg1: i32) -> (i32, i32) {
    %c0_i32 = arith.constant 0 : i32
    %c0_i32_0 = arith.constant 0 : i32
    return %arg0, %c0_i32 : i32, i32
  }
  func.func @transform_2(%arg0: i32, %arg1: i32) -> (i32, i32) {
    %c0_i32 = arith.constant 0 : i32
    %c0_i32_0 = arith.constant 0 : i32
    return %arg0, %c0_i32 : i32, i32
  }
}

</mosaic_0001>

<bundles_post_ra>
// kernel: tpu_custom_call.1
= control target key start
LH: loop header
LB: loop body
LE: loop exit
PB: predicated region body
PF: predicated region fallthrough
CT: control target
= control target key end

     0   :  { %8 = vsyncpa [#allocation3], 0  ;;  %s79_s9 = smov [#allocation2]   ;;  %s121_s0 = inlined_call_operand.hbm [shape: f32[8,256], index: 0, kind: input, shape index: {}]   ;;  %s122_s1 = inlined_call_operand.vmem [shape: f32[8,1], index: 1, kind: output, shape index: {0}]   ;;  %s123_s2 = inlined_call_operand.vmem [shape: f32[8,1], index: 2, kind: output, shape index: {1}]  }
   0x1   :  { %s15_s10 = sshll.u32 %s79_s9, 4  ;;  %s16_s10 = int_to_ptr.vmem [resolvable:$true] %s15_s10 }
   0x2   :  { %s65_s11 = scalar_lea.vmem %s16_s10, 256  ;;  %p70_p1 = scmp.lt.s32.totalorder %s16_s10, %s16_s10 }
   0x3   :  { %p66_p0 = scmp.ne.s32.totalorder %s16_s10, %s65_s11  ;;  %p71_p2 = scmp.lt.s32.totalorder %s65_s11, %s65_s11 }
   0x5   :  { %p72_p3 = por %p71_p2, %p70_p1 }
   0x7   :  { %p73_p4 = pnand %p72_p3, %p66_p0 }
   0x9   :  { %76 = shalt.err (!%p73_p4)
}
   0xa   :  { %18 = dma.hbm_to_vmem [thread:$0]  %s121_s0, 256, %s16_s10, [#allocation3]  }
   0xb   :  { %77 = dma.done.wait [#allocation3], 256  }
   0xc   :  { %78 = vsyncadd [#allocation3], 4294967040  ;;  %vm26_vm0 = vcmask 7168   ;;  %v80_v0 = vmov 0.0   ;;  %v29_v1 = vld [vmem:[#allocation2] sm:$0xff]  ;;  %v30_v2 = vld [vmem:[#allocation2 + $0x8] sm:$0xff] }
   0xd   :  { %27 = vst.msk [vmem:[%s122_s1] sm:$0xff] %vm26_vm0, %v80_v0  ;;  %28 = vst.msk [vmem:[%s123_s2] sm:$0xff] %vm26_vm0, %v80_v0  ;;  %v32_v3 = vadd.f32 %v30_v2, %v29_v1  ;;  %v39_v4 = vmul.f32 %v29_v1, %v29_v1  ;;  %v40_v5 = vmul.f32 %v30_v2, %v30_v2 }
   0xf   :  { %33 = vadd.xlane.f32.xlu0 %v32_v3  ;;  %v41_v6 = vadd.f32 %v40_v5, %v39_v4 }
  0x13   :  { %42 = vadd.xlane.f32.xlu0 %v41_v6 }
  0x14   :  { %v31_v7 = vld [vmem:[%s122_s1] sm:$0xff] }
  0x15   :  { %v38_v10 = vld [vmem:[%s123_s2] sm:$0xff] }
  0x98   :  { %v34_v8 = vpop.xlane.xlu0 %33 }
  0x99   :  { %v35_v9 = vadd.f32 %v34_v8, %v31_v7 }
  0x9b   :  { %37 = vst.msk [vmem:[%s122_s1] sm:$0xff] %vm26_vm0, %v35_v9 }
  0x9c   :  { %v43_v11 = vpop.xlane.xlu0 %42 }
  0x9d   :  { %v44_v12 = vadd.f32 %v43_v11, %v38_v10 }
  0x9f   :  { %45 = vst.msk [vmem:[%s123_s2] sm:$0xff] %vm26_vm0, %v44_v12 }
  0xa0   :  { %54 = vsyncpa [#allocation3], 1 }

</bundles_post_ra>
